<compile_context>
chip_gen: v7x
topology: tpu7x:2x2x1
jax: 0.10.0
libtpu: 0.0.40
codegen_flags: <defaults>
</compile_context>

<pallas_src>
import jax
import jax.numpy as jnp
from jax.experimental import pallas as pl
from jax.experimental.pallas import tpu as pltpu


def normalizer_kernel(x_ref, mean_ref, std_ref, out_ref):
    # One divide per feature (1, D), then a broadcast multiply per element,
    # instead of a per-element EUP divide.
    inv_std = 1.0 / std_ref[...]                        # (1, D)
    out_ref[...] = (x_ref[...] - mean_ref[...]) * inv_std


def normalizer_forward(x, mean, std, *, tile_m=512):
    """x: (B, in_dim) float32; mean/std: (in_dim,) float32."""
    B, D = x.shape
    mean2 = mean.reshape(1, D)
    std2 = std.reshape(1, D)

    # Batch tile: whole batch if small (block == full dim is always legal),
    # otherwise a multiple-of-8 tile; mean/std stay resident across tiles.
    tm = B if B <= tile_m else tile_m
    grid = (pl.cdiv(B, tm),)

    return pl.pallas_call(
        normalizer_kernel,
        out_shape=jax.ShapeDtypeStruct((B, D), x.dtype),
        grid=grid,
        in_specs=[
            pl.BlockSpec((tm, D), lambda i: (i, 0)),   # x tile (batch-tiled)
            pl.BlockSpec((1, D), lambda i: (0, 0)),    # mean (VMEM-resident)
            pl.BlockSpec((1, D), lambda i: (0, 0)),    # std  (VMEM-resident)
        ],
        out_specs=pl.BlockSpec((tm, D), lambda i: (i, 0)),
        compiler_params=pltpu.CompilerParams(
            dimension_semantics=("parallel",)),
    )(x, mean2, std2)


def normalizer_ref(x, mean, std):
    """Pure-JAX reference of Normalizer.forward."""
    return (x - mean[None, :]) / std[None, :]


if __name__ == "__main__":
    B, IN_DIM = 16, 32

    key = jax.random.PRNGKey(0)
    kx, km, ks = jax.random.split(key, 3)
    x = jax.random.normal(kx, (B, IN_DIM), jnp.float32)
    mean = 0.1 * jax.random.normal(km, (IN_DIM,), jnp.float32)
    std = 0.5 + jax.random.uniform(ks, (IN_DIM,), jnp.float32)  # strictly > 0

    # tile_m=8 exercises the batch-tiled path (grid=(2,)) at this small size.
    out = normalizer_forward(x, mean, std, tile_m=8)
    out = jax.block_until_ready(out)

    ref = normalizer_ref(x, mean, std)
    assert out.shape == (B, IN_DIM)
    assert jnp.allclose(out, ref, atol=1e-5, rtol=1e-5)
    print("KERNEL_OK")
</pallas_src>

<mosaic_0001>
module attributes {stable_mosaic.version = 11 : i64} {
  func.func @normalizer_kernel(%arg0: i32, %arg1: memref<8x32xf32, #tpu.memory_space<vmem>>, %arg2: memref<1x32xf32, #tpu.memory_space<vmem>>, %arg3: memref<1x32xf32, #tpu.memory_space<vmem>>, %arg4: memref<8x32xf32, #tpu.memory_space<vmem>>) attributes {dimension_semantics = [#tpu.dimension_semantics<parallel>], iteration_bounds = array<i64: 2>, scalar_prefetch = 0 : i64, scratch_operands = 0 : i64, tpu.core_type = #tpu.core_type<tc>, window_params = [{transform_indices = @transform_0, window_bounds = array<i64: 8, 32>}, {pipeline_mode = #tpu.pipeline_mode<synchronous>, transform_indices = @transform_1, window_bounds = array<i64: 1, 32>}, {pipeline_mode = #tpu.pipeline_mode<synchronous>, transform_indices = @transform_2, window_bounds = array<i64: 1, 32>}, {transform_indices = @transform_3, window_bounds = array<i64: 8, 32>}]} {
    %c0 = arith.constant 0 : index
    %c0_0 = arith.constant 0 : index
    %0 = vector.load %arg3[%c0, %c0_0] : memref<1x32xf32, #tpu.memory_space<vmem>>, vector<1x32xf32>
    %cst = arith.constant 1.000000e+00 : f32
    %1 = vector.broadcast %cst : f32 to vector<1x32xf32>
    %2 = arith.divf %1, %0 : vector<1x32xf32>
    %c0_1 = arith.constant 0 : index
    %c0_2 = arith.constant 0 : index
    %3 = vector.load %arg1[%c0_1, %c0_2] : memref<8x32xf32, #tpu.memory_space<vmem>>, vector<8x32xf32>
    %c0_3 = arith.constant 0 : index
    %c0_4 = arith.constant 0 : index
    %4 = vector.load %arg2[%c0_3, %c0_4] : memref<1x32xf32, #tpu.memory_space<vmem>>, vector<1x32xf32>
    %5 = vector.broadcast %4 : vector<1x32xf32> to vector<8x32xf32>
    %6 = arith.subf %3, %5 : vector<8x32xf32>
    %7 = vector.broadcast %2 : vector<1x32xf32> to vector<8x32xf32>
    %8 = arith.mulf %6, %7 : vector<8x32xf32>
    %c0_5 = arith.constant 0 : index
    %c0_6 = arith.constant 0 : index
    %9 = vector.load %arg4[%c0_5, %c0_6] : memref<8x32xf32, #tpu.memory_space<vmem>>, vector<8x32xf32>
    tpu.vector_store %arg4[%c0_5, %c0_6], %8 {strides = array<i32>} : memref<8x32xf32, #tpu.memory_space<vmem>>, vector<8x32xf32>,
    return
  }
  func.func @transform_0(%arg0: i32) -> (i32, i32) {
    %c0_i32 = arith.constant 0 : i32
    %c0_i32_0 = arith.constant 0 : i32
    return %arg0, %c0_i32 : i32, i32
  }
  func.func @transform_1(%arg0: i32) -> (i32, i32) {
    %c0_i32 = arith.constant 0 : i32
    %c0_i32_0 = arith.constant 0 : i32
    %c0_i32_1 = arith.constant 0 : i32
    return %c0_i32, %c0_i32_0 : i32, i32
  }
  func.func @transform_2(%arg0: i32) -> (i32, i32) {
    %c0_i32 = arith.constant 0 : i32
    %c0_i32_0 = arith.constant 0 : i32
    %c0_i32_1 = arith.constant 0 : i32
    return %c0_i32, %c0_i32_0 : i32, i32
  }
  func.func @transform_3(%arg0: i32) -> (i32, i32) {
    %c0_i32 = arith.constant 0 : i32
    %c0_i32_0 = arith.constant 0 : i32
    return %arg0, %c0_i32 : i32, i32
  }
}

</mosaic_0001>

<bundles_post_ra>
// kernel: tpu_custom_call.1
= control target key start
LH: loop header
LB: loop body
LE: loop exit
PB: predicated region body
PF: predicated region fallthrough
CT: control target
= control target key end

     0   :  { %8 = vsyncpa [#allocation3], 0  ;;  %s639_s0 = inlined_call_operand.hbm [shape: f32[16,32], index: 0, kind: input, shape index: {}]   ;;  %s640_s1 = inlined_call_operand.vmem [shape: f32[1,32], index: 1, kind: input, shape index: {}]   ;;  %s641_s2 = inlined_call_operand.vmem [shape: f32[1,32], index: 2, kind: input, shape index: {}]   ;;  %s642_s3 = inlined_call_operand.hbm [shape: f32[16,32], index: 3, kind: output, shape index: {}]  }
   0x1   :  { %10 = vsyncpa [#allocation3 + $0x1], 0 }
   0x2   :  { %11 = vsyncpa [#allocation4], 0 }
   0x3   :  { %13 = vsyncpa [#allocation4 + $0x1], 0  ;;  %s472_s12 = smov 0   ;;  %s474_s13 = smov 0  }
   0x4   :  { %s476_s14 = smov 0   ;;  %s478_s15 = smov 0  }
   0x5 LB: > { %s493_s16 = sadd.s32 4294967295, %s448_s15   ;;  %s291_s17 = sadd.s32 4294967294, %s448_s15   ;;  %s448_s15 = sphi %s478_s15, %s657_s15   ;;  %s444_s14 = sphi %s476_s14, %s656_s14   ;;  %s440_s13 = sphi %s474_s13, %s655_s13   ;;  %s436_s12 = sphi %s472_s12, %s654_s12  }
   0x6   : > { %s497_s18 = sadd.s32 1, %s448_s15   ;;  %s26_s19 = sadd.s32 1, %s444_s14 }
   0x7   : > { %s23_s20 = ssub.s32 %s448_s15, %s497_s18  ;;  %p33_p0 = scmp.ne.s32.totalorder %s444_s14, %s440_s13 }
   0x8   : > { %p24_p1 = scmp.eq.s32.totalorder %s23_s20, 0  ;;  %p34_p2 = scmp.eq.s32.totalorder %s448_s15, 0 }
   0x9   : > { %p39_p3 = scmp.ne.s32.totalorder %s440_s13, %s436_s12  ;;  %p40_p4 = scmp.eq.s32.totalorder %s493_s16, 0 }
   0xa   : > { %s509_s21 = scalar_select %p24_p1, %s444_s14, %s26_s19  }
   0xb   : > { %p511_p5 = por %p34_p2, %p33_p0  ;;  %p515_p6 = por %p40_p4, %p39_p3 }
   0xc   : > { %p105_p7 = scmp.eq.s32.totalorder %s493_s16, 1  ;;  %p111_p8 = scmp.eq.s32.totalorder %s291_s17, 1 }
   0xd   : > { %p316_p10 = scmp.lt.s32.totalorder %s448_s15, 2  ;;  %s137_s26 = sand.u32 1, %s444_s14  }
   0xe   : > { %p522_p11 = por %p105_p7, %p33_p0  ;;  %p526_p12 = por %p111_p8, %p39_p3 }
   0xf   : > { %s295_s27 = sshll.u32 %s448_s15, 7  ;;  %s294_s28 = sshll.u32 %s137_s26, 3 }
  0x10   : > { %s646_s24 = scalar_select %p522_p11, 1, 0 }
  0x11   : > { %s647_s25 = scalar_select %p526_p12, 1, 0 }
  0x12   : > { %s535_s4 = scalar_lea.hbm %s639_s0, %s295_s27  ;;  %s141_s5 = scalar_lea.vmem [#allocation2], %s294_s28 }
  0x13   : > { %s148_s6 = sshll.u32 %s141_s5, 4  ;;  %p539_p13 = pnand %p316_p10, %p511_p5  ;;  %s543_s6 = int_to_ptr.vmem [resolvable:$true] %s148_s6 }
  0x14   : > { %s138_s8 = scalar_lea.sflag [#allocation3], %s137_s26  ;;  %s352_s9 = scalar_lea.hbm %s535_s4, 128 }
  0x15   : > { %p353_p2 = scmp.ne.s32.totalorder %s535_s4, %s352_s9  ;;  %p354_p3 = pneg %p539_p13 }
  0x16   : > { %s357_s17 = scalar_lea.hbm %s639_s0, 256  ;;  %p358_p5 = scmp.lt.u32.totalorder %s535_s4, %s639_s0 }
  0x17   : > { %p355_p4 = pnand %p354_p3, %p353_p2  ;;  %p359_p8 = scmp.lt.u32.totalorder %s357_s17, %s352_s9 }
  0x18   : > { %p361_p9 = scmp.lt.u32.totalorder %s352_s9, %s535_s4 }
  0x19   : > { %p356_p7 = pneg %p355_p4  ;;  %p360_p10 = por %p359_p8, %p358_p5 }
  0x1b   : > { %p362_p0 = por %p361_p9, %p360_p10 }
  0x1d   : > { %p363_p1 = pnand %p362_p0, %p356_p7 }
  0x1f   : > { %366 = shalt.err (!%p363_p1)
}
  0x20   : > { %s367_s22 = scalar_lea.vmem %s543_s6, 128  ;;  %s450_s26 = smov [#allocation2]  }
  0x21   : > { %p368_p2 = scmp.ne.s32.totalorder %s543_s6, %s367_s22  ;;  %s372_s27 = sshll.u32 %s450_s26, 4  ;;  %s373_s27 = int_to_ptr.vmem [resolvable:$false] %s372_s27 }
  0x22   : > { %s374_s28 = scalar_lea.vmem %s373_s27, 256  ;;  %p375_p11 = scmp.lt.s32.totalorder %s543_s6, %s373_s27 }
  0x23   : > { %p370_p4 = pnand %p368_p2, %p354_p3  ;;  %p376_p5 = scmp.lt.s32.totalorder %s374_s28, %s367_s22 }
  0x25   : > { %p371_p12 = pneg %p370_p4  ;;  %p377_p8 = por %p376_p5, %p375_p11 }
  0x27   : > { %p378_p9 = pnand %p377_p8, %p371_p12 }
  0x29   : > { %381 = shalt.err (!%p378_p9)
}
  0x2a   : > { %311 = dma.hbm_to_vmem [thread:$0]  (!%p539_p13), %s535_s4, 128, %s543_s6, %s138_s8  }
  0x2b   : > { %p649_p0 = scmp.lt.s32.totalorder %s448_s15, 3  ;;  %p650_p1 = scmp.ge.s32.totalorder %s448_s15, 1 }
  0x2d   : > { %p154_p3 = pnand %p650_p1, %p649_p0 }
  0x2e   : > { %s577_s29 = sand.u32 (!%p154_p3), 1, %s440_s13  }
  0x2f   : > { %157 = sbr.rel (%p154_p3) target bundleno = 85 (0x55), region = 32  ;;  %s297_s30 = sshll.u32 (!%p154_p3), %s577_s29, 3 }
  0x30   : > { %s160_s5 = scalar_lea.sflag (!%p154_p3), [#allocation3], %s577_s29  ;;  %s163_s9 = scalar_lea.vmem (!%p154_p3), [#allocation2], %s297_s30 }
  0x36   : > { %427 = dma.done.wait (%p515_p6), %s160_s5, 128  }
  0x37   : > { %429 = vsyncadd (%p515_p6), %s160_s5, 4294967168  ;;  %v186_v0 = vld [vmem:[%s641_s2] sm:$0x1]  ;;  %v199_v1 = vlaneseq  ;;  %s185_s23 = scalar_lea.vmem [#allocation5], %s297_s30  ;;  %s301_s11 = sshll.u32 %s493_s16, 7  ;;  %vm205_vm0 = vcmask 261120  }
  0x38   : > { %350 = vrcp.f32 %v186_v0  ;;  %v189_v3 = vld [vmem:[%s163_s9] sm:$0xff]  ;;  %s221_s10 = sshll.u32 %s185_s23, 4  ;;  %s597_s20 = scalar_lea.hbm %s642_s3, %s301_s11  ;;  %s592_s10 = int_to_ptr.vmem [resolvable:$true] %s221_s10 }
  0x39   : > { %v200_v2 = vshrl.u32 %v199_v1, 7  ;;  %v299_v4 = vld [vmem:[%s640_s1] ss:$0 sm:$0xff]  ;;  %s208_s22 = scalar_lea.sflag [#allocation4], %s577_s29  ;;  %s382_s26 = scalar_lea.vmem %s592_s10, 128 }
  0x3a   : > { %v197_v6 = vsub.f32 %v189_v3, %v299_v4  ;;  %p383_p6 = scmp.ne.s32.totalorder %s592_s10, %s382_s26  ;;  %p651_p11 = scmp.ne.s32.totalorder %s646_s24, 0 }
  0x3b   : > { %v201_v5 = vsub.s32 0, %v200_v2  ;;  %s451_s16 = smov [#allocation5]  }
  0x3c   : > { %p384_p12 = pnand %p383_p6, %p651_p11  ;;  %s386_s27 = sshll.u32 %s451_s16, 4  ;;  %s387_s27 = int_to_ptr.vmem [resolvable:$false] %s386_s27 }
  0x3d   : > { %s388_s28 = scalar_lea.vmem %s387_s27, 256  ;;  %p389_p7 = scmp.lt.s32.totalorder %s592_s10, %s387_s27 }
  0x3e   : > { %p385_p13 = pneg %p384_p12  ;;  %p390_p10 = scmp.lt.s32.totalorder %s388_s28, %s382_s26 }
  0x40   : > { %p391_p2 = por %p390_p10, %p389_p7 }
  0x42   : > { %v351_v7 = vpop.eup %350  ;;  %p392_p4 = pnand %p391_p2, %p385_p13 }
  0x43   : > { %v202_v8 = vrot.slane %v351_v7, %v201_v5 }
  0x45   : > { %v204_v9 = vmul.f32 %v202_v8, %v197_v6 }
  0x47   : > { %206 = vst.msk [vmem:[%s185_s23] sm:$0xff] %vm205_vm0, %v204_v9 }
  0x48   : > { %395 = shalt.err (!%p392_p4)
}
  0x49   : > { %s396_s29 = scalar_lea.hbm %s597_s20, 128  ;;  %s400_s9 = scalar_lea.hbm %s642_s3, 256 }
  0x4a   : > { %p397_p5 = scmp.ne.s32.totalorder %s597_s20, %s396_s29  ;;  %p401_p0 = scmp.lt.u32.totalorder %s597_s20, %s642_s3 }
  0x4b   : > { %p402_p1 = scmp.lt.u32.totalorder %s400_s9, %s396_s29  ;;  %p404_p6 = scmp.lt.u32.totalorder %s396_s29, %s597_s20 }
  0x4c   : > { %p398_p8 = pnand %p397_p5, %p651_p11 }
  0x4d   : > { %p403_p3 = por %p402_p1, %p401_p0 }
  0x4e   : > { %p399_p9 = pneg %p398_p8 }
  0x4f   : > { %p405_p12 = por %p404_p6, %p403_p3 }
  0x51   : > { %p406_p13 = pnand %p405_p12, %p399_p9 }
  0x53   : > { %409 = shalt.err (!%p406_p13)
}
  0x54   : > { %306 = dma.vmem_to_hbm [thread:$0]  (%p651_p11), %s592_s10, 128, %s597_s20, %s208_s22  }
  0x55 PF: > { %s233_s6 = sand.u32 1, %s436_s12   ;;  %p652_p7 = scmp.ne.s32.totalorder %s647_s25, 0 }
  0x56   : > { %p653_p10 = scmp.ge.s32.totalorder %s448_s15, 2  ;;  %s234_s8 = scalar_lea.sflag [#allocation4], %s233_s6 }
  0x58   : > { %p313_p2 = pnand %p653_p10, %p652_p7 }
  0x5a   : > { %431 = dma.done.wait (!%p313_p2), %s234_s8, 128  }
  0x5b   : > { %433 = vsyncadd (!%p313_p2), %s234_s8, 4294967168  ;;  %p16_p4 = scmp.ge.s32.totalorder %s497_s18, 4   ;;  %s654_s12 = smov %s440_s13 }
  0x5c   : > { %s655_s13 = smov %s444_s14  ;;  %s656_s14 = smov %s509_s21 }
  0x5d   : > { %s657_s15 = smov %s497_s18  ;;  %18 = sbr.rel (!%p16_p4) target bundleno = 5 (0x5), region = 77 }
  0x64   :  { %239 = vsyncpa [#allocation3], 1 }
  0x65   :  { %241 = vsyncpa [#allocation3 + $0x1], 1 }
  0x66   :  { %242 = vsyncpa [#allocation4], 1 }
  0x67   :  { %244 = vsyncpa [#allocation4 + $0x1], 1 }

</bundles_post_ra>
